<compile_context>
chip_gen: v5e
topology: v5e:2x2
jax: 0.10.0
libtpu: 0.0.40
codegen_flags: <defaults>
</compile_context>

<pallas_src>
import functools
import math

import numpy as np
import jax
import jax.numpy as jnp
from jax.experimental import pallas as pl
from jax.experimental.pallas import tpu as pltpu


def _round_up(x, m):
    return (x + m - 1) // m * m


def _simmtm_kernel(lhs_ref, rhs_ref, sim_ref, rowloss_ref, *,
                   inv_temp, inv_n_pos, log_n_pos,
                   b_actual, oral_b, n_views, tr):
    i = pl.program_id(0)
    bp = rhs_ref.shape[1]

    # ---- similarity row block: (Tr, Dp) x (Dp, Bp) NN matmul on the MXU ----
    sim = jax.lax.dot_general(
        lhs_ref[...], rhs_ref[...],
        dimension_numbers=(((1,), (0,)), ((), ())),
        preferred_element_type=jnp.float32)                      # (Tr, Bp) f32
    sim_ref[...] = sim

    # ---- row / column ids for this block (cheap int VPU work) ----
    row_ids = i * tr + jax.lax.broadcasted_iota(jnp.int32, (tr, bp), 0)
    col_ids = jax.lax.broadcasted_iota(jnp.int32, (tr, bp), 1)
    diff = col_ids - row_ids
    in_cols = col_ids < b_actual                 # drop padded columns
    valid = in_cols & (diff != 0)                # all real, non-diagonal columns

    scaled = sim * inv_temp                      # multiply by trace-time 1/T

    # ---- logsumexp over the non-diagonal real columns ----
    masked = jnp.where(valid, scaled, jnp.float32(-1e30))
    m = jnp.max(masked, axis=1, keepdims=True)
    lse = m + jnp.log(jnp.sum(jnp.exp(masked - m), axis=1, keepdims=True))

    # ---- positives mask built from iotas: |col - row| == k * oral_B ----
    pos = (diff == oral_b) | (diff == -oral_b)
    for k in range(2, n_views):                  # static unroll (n_views is small)
        off = k * oral_b
        pos = pos | (diff == off) | (diff == -off)
    pos = pos & in_cols
    pos_sum = jnp.sum(jnp.where(pos, scaled, 0.0), axis=1, keepdims=True)

    # ---- closed-form KLDiv('batchmean') row term ----
    # (kept as a (Tr, 1) store, flash-attention lse style; its traffic is
    #  negligible next to the lane-dense (Tr, Bp) sim writeback)
    rowloss_ref[...] = lse - pos_sum * inv_n_pos - log_n_pos


def _build_masks(cur_b, oral_b):
    """Static positives mask (B,B) + per-row reorder index (B,B-1) reproducing
    get_positive_and_negative_mask followed by the row-major masked_select."""
    n_views = cur_b // oral_b
    pos = np.zeros((cur_b, cur_b), dtype=np.float64)
    for i in range(n_views):
        k = oral_b * i
        pos += np.eye(cur_b, cur_b, k=k)
        pos += np.eye(cur_b, cur_b, k=-k)
    np.fill_diagonal(pos, 0.0)
    pos = (pos > 0).astype(np.float32)

    reorder = np.zeros((cur_b, cur_b - 1), dtype=np.int32)
    n_pos = None
    for r in range(cur_b):
        pcols = [c for c in range(cur_b) if pos[r, c] > 0]
        ncols = [c for c in range(cur_b) if c != r and pos[r, c] == 0]
        if n_pos is None:
            n_pos = len(pcols)
        assert len(pcols) == n_pos, "rows must have equal positive counts"
        reorder[r] = np.array(pcols + ncols, dtype=np.int32)
    assert n_pos >= 1, "need at least 2 views for SimMTM loss"
    return pos, reorder, n_pos


def simmtm_loss(batch_emb_om, batch_x, temperature, matmul_dtype=None):
    b, d = batch_emb_om.shape
    oral_b = int(batch_x.shape[0])
    assert b % oral_b == 0, "cur batch must be a multiple of the oral batch"
    n_views = b // oral_b
    assert n_views >= 2, "SimMTM loss needs at least 2 views per sample"
    n_pos = n_views - 1

    # Static reorder index reproducing torch's [positives | negatives] layout.
    _, reorder_np, n_pos_chk = _build_masks(b, oral_b)
    assert n_pos_chk == n_pos

    # On v6e/v7x, passing matmul_dtype=jnp.bfloat16 for f32 inputs runs the MXU
    # at its native rate (softmax math stays f32); default keeps the input dtype
    # so the f32 self-test matches the PyTorch reference.
    mm_dtype = (jnp.dtype(matmul_dtype) if matmul_dtype is not None
                else jnp.dtype(batch_emb_om.dtype))

    # ---- hoisted one-shot L2 normalization (f32 math, F.normalize eps) ----
    x32 = batch_emb_om.astype(jnp.float32)
    inv = jax.lax.rsqrt(jnp.maximum(jnp.sum(x32 * x32, axis=1, keepdims=True),
                                    jnp.float32(1e-24)))  # == 1/max(||x||, 1e-12)
    norm_emb = (x32 * inv).astype(mm_dtype)

    # ---- padded, layout-friendly shapes ----
    tr = 128                                   # MXU-native row tile on v5e/v6e/v7x
    bp = _round_up(max(b, tr), tr)             # rows & sim lane dim: multiple of 128
    dp = _round_up(max(d, 128), 128)           # feature lane dim: multiple of 128

    lhs_p = jnp.zeros((bp, dp), mm_dtype).at[:b, :d].set(norm_emb)
    rhs_p = lhs_p.T                            # (Dp, Bp) K-major resident RHS

    kernel = functools.partial(
        _simmtm_kernel,
        inv_temp=1.0 / float(temperature),
        inv_n_pos=1.0 / float(n_pos),
        log_n_pos=float(math.log(n_pos)),
        b_actual=int(b),
        oral_b=oral_b,
        n_views=n_views,
        tr=tr,
    )

    # VMEM budget from the actual block shapes (headroom, capped for v7x 64 MiB).
    mm_isz = jnp.dtype(mm_dtype).itemsize
    est = (2 * tr * dp * mm_isz          # LHS row blocks (double-buffered)
           + 2 * dp * bp * mm_isz        # resident RHS (constant block index)
           + 2 * tr * bp * 4             # sim output blocks
           + 8 * tr * bp * 4             # in-kernel f32/int32 temporaries
           + 4 * tr * 4)
    vmem_limit = int(min(40 << 20, max(32 << 20, int(1.25 * est))))
    # TODO(synk): for very large B*D, add a K (feature) grid axis with an f32
    # accumulator and single-buffer the resident RHS instead of relying on the cap.

    sim_p, rowloss_p = pl.pallas_call(
        kernel,
        grid=(bp // tr,),
        in_specs=[
            pl.BlockSpec((tr, dp), lambda i: (i, 0)),   # normalized rows (LHS tile)
            pl.BlockSpec((dp, bp), lambda i: (0, 0)),   # normalized^T (resident RHS)
        ],
        out_specs=(
            pl.BlockSpec((tr, bp), lambda i: (i, 0)),   # similarity row block
            pl.BlockSpec((tr, 1), lambda i: (i, 0)),    # per-row KL term
        ),
        out_shape=(
            jax.ShapeDtypeStruct((bp, bp), jnp.float32),
            jax.ShapeDtypeStruct((bp, 1), jnp.float32),
        ),
        compiler_params=pltpu.CompilerParams(
            dimension_semantics=("parallel",),
            vmem_limit_bytes=vmem_limit,
        ),
    )(lhs_p, rhs_p)

    sim = sim_p[:b, :b]
    loss = jnp.sum(rowloss_p[:b, 0]) / b

    # Reordered [positives | negatives] logits: static O(B^2) index gather in
    # plain JAX on the kernel-produced similarity matrix.
    logits = jnp.take_along_axis(sim, jnp.asarray(reorder_np), axis=1)
    return loss, sim, logits


if __name__ == "__main__":
    key = jax.random.PRNGKey(0)
    k1, k2 = jax.random.split(key)

    oral_b, n_views, d = 2, 3, 32
    cur_b = oral_b * n_views
    temperature = 0.2

    # batch_emb_om: (cur_B, D) embeddings (original + masked views stacked).
    batch_emb_om = jax.random.normal(k1, (cur_b, d), dtype=jnp.float32)
    # batch_x: only its leading dim (oral batch size) is used by the loss.
    batch_x = jax.random.normal(k2, (oral_b, 8, 4), dtype=jnp.float32)

    loss, sim, logits = simmtm_loss(batch_emb_om, batch_x, temperature)
    jax.block_until_ready((loss, sim, logits))

    # ---- numpy reference check (mirrors the PyTorch forward) ----
    emb = np.asarray(batch_emb_om).astype(np.float64)
    nrm = emb / np.maximum(np.linalg.norm(emb, axis=1, keepdims=True), 1e-12)
    sim_ref = nrm @ nrm.T
    pos_np, reorder_np, n_pos = _build_masks(cur_b, oral_b)
    logits_ref = np.take_along_axis(sim_ref, reorder_np, axis=1)
    scaled = logits_ref / temperature
    mref = scaled.max(-1, keepdims=True)
    pred = scaled - (mref + np.log(np.exp(scaled - mref).sum(-1, keepdims=True)))
    y = np.zeros_like(logits_ref)
    y[:, :n_pos] = 1.0 / n_pos
    terms = np.where(y > 0, y * (np.log(np.where(y > 0, y, 1.0)) - pred), 0.0)
    loss_ref = terms.sum() / cur_b

    assert np.allclose(np.asarray(sim), sim_ref, atol=3e-5), "similarity mismatch"
    assert np.allclose(np.asarray(logits), logits_ref, atol=3e-5), "logits mismatch"
    assert abs(float(loss) - float(loss_ref)) < 1e-4, "loss mismatch"

    print("KERNEL_OK")
</pallas_src>

<mosaic_0001>
module attributes {stable_mosaic.version = 11 : i64} {
  func.func @_simmtm_kernel(%arg0: i32, %arg1: memref<128x128xf32, #tpu.memory_space<vmem>>, %arg2: memref<128x128xf32, #tpu.memory_space<vmem>>, %arg3: memref<128x128xf32, #tpu.memory_space<vmem>>, %arg4: memref<128x1xf32, #tpu.memory_space<vmem>>) attributes {dimension_semantics = [#tpu.dimension_semantics<parallel>], iteration_bounds = array<i64: 1>, scalar_prefetch = 0 : i64, scratch_operands = 0 : i64, tpu.core_type = #tpu.core_type<tc>, window_params = [{transform_indices = @transform_0, window_bounds = array<i64: 128, 128>}, {pipeline_mode = #tpu.pipeline_mode<synchronous>, transform_indices = @transform_1, window_bounds = array<i64: 128, 128>}, {transform_indices = @transform_2, window_bounds = array<i64: 128, 128>}, {transform_indices = @transform_3, window_bounds = array<i64: 128, 1>}]} {
    %c0 = arith.constant 0 : index
    %c0_0 = arith.constant 0 : index
    %0 = vector.load %arg1[%c0, %c0_0] : memref<128x128xf32, #tpu.memory_space<vmem>>, vector<128x128xf32>
    %c0_1 = arith.constant 0 : index
    %c0_2 = arith.constant 0 : index
    %1 = vector.load %arg2[%c0_1, %c0_2] : memref<128x128xf32, #tpu.memory_space<vmem>>, vector<128x128xf32>
    %cst = arith.constant dense<0.000000e+00> : vector<128x128xf32>
    %2 = tpu.matmul %0, %1, %cst {dimension_numbers = #tpu.dot_dimension_numbers<[1], [0], [0], [1], [0, 0, 1, 1], [], []>} : vector<128x128xf32>, vector<128x128xf32>, vector<128x128xf32> -> vector<128x128xf32>
    %c0_3 = arith.constant 0 : index
    %c0_4 = arith.constant 0 : index
    %3 = vector.load %arg3[%c0_3, %c0_4] : memref<128x128xf32, #tpu.memory_space<vmem>>, vector<128x128xf32>
    tpu.vector_store %arg3[%c0_3, %c0_4], %2 {strides = array<i32>} : memref<128x128xf32, #tpu.memory_space<vmem>>, vector<128x128xf32>,
    %c128_i32 = arith.constant 128 : i32
    %4 = arith.muli %arg0, %c128_i32 : i32
    %5 = tpu.iota {dimensions = array<i32: 0>} : vector<128x128xi32>
    %6 = vector.broadcast %4 : i32 to vector<128x128xi32>
    %7 = arith.addi %6, %5 : vector<128x128xi32>
    %8 = tpu.iota {dimensions = array<i32: 1>} : vector<128x128xi32>
    %9 = arith.subi %8, %7 : vector<128x128xi32>
    %c6_i32 = arith.constant 6 : i32
    %10 = vector.broadcast %c6_i32 : i32 to vector<128x128xi32>
    %11 = arith.cmpi slt, %8, %10 : vector<128x128xi32>
    %c0_i32 = arith.constant 0 : i32
    %12 = vector.broadcast %c0_i32 : i32 to vector<128x128xi32>
    %13 = arith.cmpi ne, %9, %12 : vector<128x128xi32>
    %14 = arith.andi %11, %13 : vector<128x128xi1>
    %cst_5 = arith.constant 5.000000e+00 : f32
    %15 = vector.broadcast %cst_5 : f32 to vector<128x128xf32>
    %16 = arith.mulf %2, %15 : vector<128x128xf32>
    %cst_6 = arith.constant -1.000000e+30 : f32
    %17 = vector.broadcast %cst_6 : f32 to vector<128x128xf32>
    %18 = arith.select %14, %16, %17 : vector<128x128xi1>, vector<128x128xf32>
    %cst_7 = arith.constant dense<0xFF800000> : vector<128xf32>
    %19 = vector.multi_reduction <maximumf>, %18, %cst_7 [1] : vector<128x128xf32> to vector<128xf32>
    %20 = vector.shape_cast %19 : vector<128xf32> to vector<128x1xf32>
    %21 = vector.broadcast %20 : vector<128x1xf32> to vector<128x128xf32>
    %22 = arith.subf %18, %21 : vector<128x128xf32>
    %23 = math.exp %22 : vector<128x128xf32>
    %cst_8 = arith.constant dense<0.000000e+00> : vector<128xf32>
    %24 = vector.multi_reduction <add>, %23, %cst_8 [1] : vector<128x128xf32> to vector<128xf32>
    %25 = vector.shape_cast %24 : vector<128xf32> to vector<128x1xf32>
    %26 = math.log %25 : vector<128x1xf32>
    %27 = arith.addf %20, %26 : vector<128x1xf32>
    %c2_i32 = arith.constant 2 : i32
    %28 = vector.broadcast %c2_i32 : i32 to vector<128x128xi32>
    %29 = arith.cmpi eq, %9, %28 : vector<128x128xi32>
    %c-2_i32 = arith.constant -2 : i32
    %30 = vector.broadcast %c-2_i32 : i32 to vector<128x128xi32>
    %31 = arith.cmpi eq, %9, %30 : vector<128x128xi32>
    %32 = arith.ori %29, %31 : vector<128x128xi1>
    %c4_i32 = arith.constant 4 : i32
    %33 = vector.broadcast %c4_i32 : i32 to vector<128x128xi32>
    %34 = arith.cmpi eq, %9, %33 : vector<128x128xi32>
    %35 = arith.ori %32, %34 : vector<128x128xi1>
    %c-4_i32 = arith.constant -4 : i32
    %36 = vector.broadcast %c-4_i32 : i32 to vector<128x128xi32>
    %37 = arith.cmpi eq, %9, %36 : vector<128x128xi32>
    %38 = arith.ori %35, %37 : vector<128x128xi1>
    %39 = arith.andi %38, %11 : vector<128x128xi1>
    %cst_9 = arith.constant 0.000000e+00 : f32
    %40 = vector.broadcast %cst_9 : f32 to vector<128x128xf32>
    %41 = arith.select %39, %16, %40 : vector<128x128xi1>, vector<128x128xf32>
    %cst_10 = arith.constant dense<0.000000e+00> : vector<128xf32>
    %42 = vector.multi_reduction <add>, %41, %cst_10 [1] : vector<128x128xf32> to vector<128xf32>
    %43 = vector.shape_cast %42 : vector<128xf32> to vector<128x1xf32>
    %cst_11 = arith.constant 5.000000e-01 : f32
    %44 = vector.broadcast %cst_11 : f32 to vector<128x1xf32>
    %45 = arith.mulf %43, %44 : vector<128x1xf32>
    %46 = arith.subf %27, %45 : vector<128x1xf32>
    %cst_12 = arith.constant 0.693147182 : f32
    %47 = vector.broadcast %cst_12 : f32 to vector<128x1xf32>
    %48 = arith.subf %46, %47 : vector<128x1xf32>
    %c0_13 = arith.constant 0 : index
    %c0_14 = arith.constant 0 : index
    %49 = vector.load %arg4[%c0_13, %c0_14] : memref<128x1xf32, #tpu.memory_space<vmem>>, vector<128x1xf32>
    tpu.vector_store %arg4[%c0_13, %c0_14], %48 {strides = array<i32>} : memref<128x1xf32, #tpu.memory_space<vmem>>, vector<128x1xf32>,
    return
  }
  func.func @transform_0(%arg0: i32) -> (i32, i32) {
    %c0_i32 = arith.constant 0 : i32
    %c0_i32_0 = arith.constant 0 : i32
    return %arg0, %c0_i32 : i32, i32
  }
  func.func @transform_1(%arg0: i32) -> (i32, i32) {
    %c0_i32 = arith.constant 0 : i32
    %c0_i32_0 = arith.constant 0 : i32
    %c0_i32_1 = arith.constant 0 : i32
    return %c0_i32, %c0_i32_0 : i32, i32
  }
  func.func @transform_2(%arg0: i32) -> (i32, i32) {
    %c0_i32 = arith.constant 0 : i32
    %c0_i32_0 = arith.constant 0 : i32
    return %arg0, %c0_i32 : i32, i32
  }
  func.func @transform_3(%arg0: i32) -> (i32, i32) {
    %c0_i32 = arith.constant 0 : i32
    %c0_i32_0 = arith.constant 0 : i32
    return %arg0, %c0_i32 : i32, i32
  }
}

</mosaic_0001>

<bundles_post_ra>
// kernel: tpu_custom_call.1
= control target key start
LH: loop header
LB: loop body
LE: loop exit
PB: predicated region body
PF: predicated region fallthrough
CT: control target
= control target key end

     0   :  { %9 = vsyncpa [#allocation3], 0  ;;  %s1756_s0 = inlined_call_operand.hbm [shape: f32[128,128], index: 0, kind: input, shape index: {}]   ;;  %s1757_s1 = inlined_call_operand.hbm [shape: f32[128,128], index: 1, kind: input, shape index: {}]   ;;  %s1758_s2 = inlined_call_operand.hbm [shape: f32[128,128], index: 2, kind: output, shape index: {0}]   ;;  %s1759_s3 = inlined_call_operand.vmem [shape: f32[128,1], index: 3, kind: output, shape index: {1}]  }
   0x1   :  { %10 = vsyncpa [#allocation6], 0 }
   0x2   :  { %11 = vsyncpa [#allocation4], 0  ;;  %s16_s14 = sshll.u32 %s1756_s0, 4  ;;  %s913_s15 = smov [#allocation2]   ;;  %s17_s14 = int_to_ptr.hbm [resolvable:$true] %s16_s14 }
   0x3   :  { %s18_s16 = sshll.u32 %s913_s15, 4  ;;  %s29_s19 = sshll.u32 %s1757_s1, 4  ;;  %s19_s16 = int_to_ptr.vmem [resolvable:$true] %s18_s16  ;;  %s30_s19 = int_to_ptr.hbm [resolvable:$true] %s29_s19 }
   0x4   :  { %s914_s20 = smov 128   ;;  %s915_s21 = smov 8  }
   0x5   :  { %24 = dma.hbm_to_vmem [thread:$0]  %s17_s14, 2048, %s19_s16, [#allocation3], %s914_s20, %s914_s20, %s915_s21  }
   0x6   :  { %s916_s22 = smov [#allocation5]  }
   0x7   :  { %s31_s23 = sshll.u32 %s916_s22, 4  ;;  %s32_s23 = int_to_ptr.vmem [resolvable:$true] %s31_s23 }
   0x8   :  { %37 = dma.hbm_to_vmem [thread:$0]  %s30_s19, 2048, %s32_s23, [#allocation6], %s914_s20, %s914_s20, %s915_s21  }
   0x9   :  { %907 = dma.done.wait [#allocation3], 2048  }
   0xa   :  { %908 = vsyncadd [#allocation3], 4294965248 }
   0xb   :  { %909 = dma.done.wait [#allocation6], 2048  }
   0xc   :  { %910 = vsyncadd [#allocation6], 4294965248  ;;  %v77_v0 = vld [vmem:[#allocation5 + $0x78] sm:$0xff]  ;;  %v76_v1 = vld [vmem:[#allocation5 + $0x70] sm:$0xff]  ;;  %v160_v32 = vlaneseq  ;;  %s684_s24 = sshll.u32 %s1758_s2, 4  ;;  %s917_s25 = smov [#allocation7]   ;;  %s685_s24 = int_to_ptr.hbm [resolvable:$true] %s684_s24 }
   0xd   :  { %78 = vmatpush.msra.mxu0 %v77_v0  ;;  %718 = vmatpush.msra.mxu1 %v77_v0  ;;  %v75_v2 = vld [vmem:[#allocation5 + $0x68] sm:$0xff]  ;;  %v74_v3 = vld [vmem:[#allocation5 + $0x60] sm:$0xff]  ;;  %v73_v4 = vld [vmem:[#allocation5 + $0x58] sm:$0xff]  ;;  %s682_s26 = sshll.u32 %s917_s25, 4  ;;  %s683_s26 = int_to_ptr.vmem [resolvable:$true] %s682_s26 }
   0xe   :  { %720 = vmatpush.msra.mxu3 %v77_v0  ;;  %719 = vmatpush.msra.mxu2 %v77_v0  ;;  %v72_v5 = vld [vmem:[#allocation5 + $0x50] sm:$0xff]  ;;  %v71_v6 = vld [vmem:[#allocation5 + $0x48] sm:$0xff]  ;;  %v70_v7 = vld [vmem:[#allocation5 + $0x40] sm:$0xff]  ;;  %v950_v33 = vshrl.u32 %v160_v32, 7  ;;  %v952_v34 = vand.u32 127, %v160_v32 }
   0xf   :  { %79 = vmatpush.msra.mxu0 %v76_v1  ;;  %721 = vmatpush.msra.mxu1 %v76_v1  ;;  %v69_v8 = vld [vmem:[#allocation5 + $0x38] sm:$0xff]  ;;  %v68_v9 = vld [vmem:[#allocation5 + $0x30] sm:$0xff]  ;;  %v67_v10 = vld [vmem:[#allocation5 + $0x28] sm:$0xff] }
  0x10   :  { %723 = vmatpush.msra.mxu3 %v76_v1  ;;  %722 = vmatpush.msra.mxu2 %v76_v1  ;;  %v66_v11 = vld [vmem:[#allocation5 + $0x20] sm:$0xff]  ;;  %v65_v12 = vld [vmem:[#allocation5 + $0x18] sm:$0xff]  ;;  %v64_v13 = vld [vmem:[#allocation5 + $0x10] sm:$0xff]  ;;  %v165_v35 = vadd.s32 32, %v950_v33  ;;  %v196_v36 = vsub.s32 %v952_v34, %v950_v33  ;;  %v166_v37 = vadd.s32 40, %v950_v33  ;;  %vm1760_vm4 = vcmp.lt.s32.totalorder %v952_v34, 6 }
  0x11   :  { %80 = vmatpush.msra.mxu0 %v75_v2  ;;  %724 = vmatpush.msra.mxu1 %v75_v2  ;;  %v63_v14 = vld [vmem:[#allocation5 + $0x8] sm:$0xff]  ;;  %v62_v15 = vld [vmem:[#allocation5] sm:$0xff]  ;;  %v48_v24 = vld [vmem:[#allocation2 + $0x10] sm:$0xff]  ;;  %v173_v42 = vadd.s32 96, %v950_v33  ;;  %v174_v44 = vadd.s32 104, %v950_v33  ;;  %v169_v46 = vadd.s32 64, %v950_v33 }
  0x12   :  { %726 = vmatpush.msra.mxu3 %v75_v2  ;;  %725 = vmatpush.msra.mxu2 %v75_v2  ;;  %v46_v16 = vld [vmem:[#allocation2] sm:$0xff]  ;;  %v51_v20 = vld [vmem:[#allocation2 + $0x28] sm:$0xff]  ;;  %v52_v25 = vld [vmem:[#allocation2 + $0x30] sm:$0xff]  ;;  %v200_v38 = vsub.s32 %v952_v34, %v165_v35  ;;  %vm437_vm0 = vcmp.eq.s32.totalorder %v196_v36, 2  ;;  %vm453_vm1 = vcmp.eq.s32.totalorder %v196_v36, 4294967294  ;;  %v960_v39 = vsub.s32 %v952_v34, %v166_v37 }
  0x13   :  { %81 = vmatpush.msra.mxu0 %v74_v3  ;;  %727 = vmatpush.msra.mxu1 %v74_v3  ;;  %v50_v17 = vld [vmem:[#allocation2 + $0x20] sm:$0xff]  ;;  %v47_v21 = vld [vmem:[#allocation2 + $0x8] sm:$0xff]  ;;  %v56_v26 = vld [vmem:[#allocation2 + $0x50] sm:$0xff]  ;;  %vm485_vm3 = vcmp.eq.s32.totalorder %v196_v36, 4  ;;  %vm213_vm12 = vcmp.ne.s32.totalorder %v196_v36, 0  ;;  %v162_v50 = vadd.s32 8, %v950_v33  ;;  %v998_v53 = vsub.s32 %v952_v34, %v173_v42 }
  0x14   :  { %729 = vmatpush.msra.mxu3 %v74_v3  ;;  %728 = vmatpush.msra.mxu2 %v74_v3  ;;  %v58_v18 = vld [vmem:[#allocation2 + $0x60] sm:$0xff]  ;;  %v59_v22 = vld [vmem:[#allocation2 + $0x68] sm:$0xff]  ;;  %v60_v27 = vld [vmem:[#allocation2 + $0x70] sm:$0xff]  ;;  %vm217_vm5 = vcmp.ne.s32.totalorder %v200_v38, 0  ;;  %vm442_vm6 = vcmp.eq.s32.totalorder %v960_v39, 2  ;;  %vm458_vm7 = vcmp.eq.s32.totalorder %v960_v39, 4294967294  ;;  %v1005_v55 = vsub.s32 %v952_v34, %v174_v44 }
  0x15   :  { %82 = vmatpush.msra.mxu0 %v73_v4  ;;  %730 = vmatpush.msra.mxu1 %v73_v4  ;;  %v54_v19 = vld [vmem:[#allocation2 + $0x40] sm:$0xff]  ;;  %v55_v23 = vld [vmem:[#allocation2 + $0x48] sm:$0xff]  ;;  %v49_v28 = vld [vmem:[#allocation2 + $0x18] sm:$0xff]  ;;  %vm441_vm9 = vcmp.eq.s32.totalorder %v200_v38, 2  ;;  %vm457_vm10 = vcmp.eq.s32.totalorder %v200_v38, 4294967294  ;;  %vm490_vm14 = vcmp.eq.s32.totalorder %v960_v39, 4  ;;  %v1018_v58 = vsub.s32 %v952_v34, %v169_v46 }
  0x16   :  { %732 = vmatpush.msra.mxu3 %v73_v4  ;;  %731 = vmatpush.msra.mxu2 %v73_v4  ;;  %v53_v29 = vld [vmem:[#allocation2 + $0x38] sm:$0xff]  ;;  %vm469_vm2 = vmor %vm437_vm0, %vm453_vm1  ;;  %vm489_vm0 = vcmp.eq.s32.totalorder %v200_v38, 4  ;;  %v167_v54 = vadd.s32 48, %v950_v33  ;;  %v1024_v59 = vsub.s32 %v952_v34, %v162_v50  ;;  %v1805_v37 = vmov 0 }
  0x17   :  { %83 = vmatpush.msra.mxu0 %v72_v5  ;;  %733 = vmatpush.msra.mxu1 %v72_v5  ;;  %v57_v30 = vld [vmem:[#allocation2 + $0x58] sm:$0xff]  ;;  %vm965_vm8 = vmor %vm469_vm2, %vm485_vm3  ;;  %vm517_vm2 = vcmp.eq.s32.totalorder %v196_v36, 4294967292  ;;  %v175_v36 = vadd.s32 112, %v950_v33  ;;  %v170_v43 = vadd.s32 72, %v950_v33 }
  0x18   :  { %735 = vmatpush.msra.mxu3 %v72_v5  ;;  %734 = vmatpush.msra.mxu2 %v72_v5  ;;  %v61_v31 = vld [vmem:[#allocation2 + $0x78] sm:$0xff]  ;;  %vm971_vm11 = vmand %vm1760_vm4, %vm217_vm5  ;;  %vm522_vm5 = vcmp.eq.s32.totalorder %v960_v39, 4294967292  ;;  %v1033_v61 = vsub.s32 %v952_v34, %v167_v54 }
  0x19   :  { %84 = vmatpush.msra.mxu0 %v71_v6  ;;  %736 = vmatpush.msra.mxu1 %v71_v6  ;;  %vm474_vm13 = vmor %vm442_vm6, %vm458_vm7  ;;  %vm521_vm6 = vcmp.eq.s32.totalorder %v200_v38, 4294967292  ;;  %v1223_v44 = vsub.s32 %v952_v34, %v175_v36  ;;  %v1849_v36 = vmov 0 }
  0x1a   :  { %738 = vmatpush.msra.mxu3 %v71_v6  ;;  %737 = vmatpush.msra.mxu2 %v71_v6  ;;  %vm977_vm15 = vmor %vm441_vm9, %vm457_vm10 }
  0x1b   :  { %85 = vmatpush.msra.mxu0 %v70_v7  ;;  %739 = vmatpush.msra.mxu1 %v70_v7  ;;  %vm984_vm1 = vmand %vm1760_vm4, %vm213_vm12  ;;  %vm449_vm12 = vcmp.eq.s32.totalorder %v998_v53, 2 }
  0x1c   :  { %741 = vmatpush.msra.mxu3 %v70_v7  ;;  %740 = vmatpush.msra.mxu2 %v70_v7  ;;  %vm989_vm3 = vmor %vm474_vm13, %vm490_vm14  ;;  %vm465_vm13 = vcmp.eq.s32.totalorder %v998_v53, 4294967294 }
  0x1d   :  { %86 = vmatpush.msra.mxu0 %v69_v8  ;;  %742 = vmatpush.msra.mxu1 %v69_v8  ;;  %vm505_vm7 = vmor %vm977_vm15, %vm489_vm0  ;;  %vm226_vm15 = vcmp.ne.s32.totalorder %v1005_v55, 0 }
  0x1e   :  { %744 = vmatpush.msra.mxu3 %v69_v8  ;;  %743 = vmatpush.msra.mxu2 %v69_v8  ;;  %vm533_vm9 = vmor %vm965_vm8, %vm517_vm2  ;;  %vm438_vm2 = vcmp.eq.s32.totalorder %v1024_v59, 2 }
  0x1f   :  { %87 = vmatpush.msra.mxu0 %v68_v9  ;;  %745 = vmatpush.msra.mxu1 %v68_v9  ;;  %vm538_vm10 = vmor %vm989_vm3, %vm522_vm5  ;;  %vm454_vm3 = vcmp.eq.s32.totalorder %v1024_v59, 4294967294 }
  0x20   :  { %747 = vmatpush.msra.mxu3 %v68_v9  ;;  %746 = vmatpush.msra.mxu2 %v68_v9  ;;  %vm537_vm8 = vmor %vm505_vm7, %vm521_vm6  ;;  %vm443_vm7 = vcmp.eq.s32.totalorder %v1033_v61, 2  ;;  %v163_v9 = vadd.s32 16, %v950_v33 }
  0x21   :  { %88 = vmatpush.msra.mxu0 %v67_v10  ;;  %748 = vmatpush.msra.mxu1 %v67_v10  ;;  %vm1039_vm14 = vmand %vm538_vm10, %vm1760_vm4  ;;  %vm497_vm10 = vcmp.eq.s32.totalorder %v998_v53, 4 }
  0x22   :  { %750 = vmatpush.msra.mxu3 %v67_v10  ;;  %749 = vmatpush.msra.mxu2 %v67_v10  ;;  %vm1046_vm0 = vmand %vm537_vm8, %vm1760_vm4 }
  0x23   :  { %89 = vmatpush.msra.mxu0 %v66_v11  ;;  %751 = vmatpush.msra.mxu1 %v66_v11  ;;  %vm1053_vm5 = vmor %vm449_vm12, %vm465_vm13  ;;  %vm225_vm12 = vcmp.ne.s32.totalorder %v998_v53, 0 }
  0x24   :  { %753 = vmatpush.msra.mxu3 %v66_v11  ;;  %752 = vmatpush.msra.mxu2 %v66_v11  ;;  %vm1063_vm6 = vmand %vm1760_vm4, %vm226_vm15  ;;  %vm486_vm15 = vcmp.eq.s32.totalorder %v1024_v59, 4 }
  0x25   :  { %90 = vmatpush.msra.mxu0 %v65_v12  ;;  %754 = vmatpush.msra.mxu1 %v65_v12  ;;  %vm470_vm13 = vmor %vm438_vm2, %vm454_vm3  ;;  %vm218_vm2 = vcmp.ne.s32.totalorder %v960_v39, 0 }
  0x26   :  { %756 = vmatpush.msra.mxu3 %v65_v12  ;;  %755 = vmatpush.msra.mxu2 %v65_v12  ;;  %vm1120_vm3 = vmor %vm470_vm13, %vm486_vm15  ;;  %vm214_vm15 = vcmp.ne.s32.totalorder %v1024_v59, 0 }
  0x27   :  { %91 = vmatpush.msra.mxu0 %v64_v13  ;;  %757 = vmatpush.msra.mxu1 %v64_v13 }
  0x28   :  { %759 = vmatpush.msra.mxu3 %v64_v13  ;;  %758 = vmatpush.msra.mxu2 %v64_v13 }
  0x29   :  { %92 = vmatpush.msra.mxu0 %v63_v14  ;;  %760 = vmatpush.msra.mxu1 %v63_v14 }
  0x2a   :  { %762 = vmatpush.msra.mxu3 %v63_v14  ;;  %761 = vmatpush.msra.mxu2 %v63_v14  ;;  %v168_v14 = vadd.s32 56, %v950_v33 }
  0x2b   :  { %93 = vmatpush.msra.mxu0 %v62_v15  ;;  %763 = vmatpush.msra.mxu1 %v62_v15 }
  0x2c   :  { %94 = vmatmul.f32.vlgmr.msra.gmra.mxu0 %v46_v16  ;;  %106 = vmatmul.f32.vlgmr.msra.gmra.mxu1 %v50_v17  ;;  %v198_v16 = vsub.s32 %v952_v34, %v163_v9 }
  0x2d   :  { %765 = vmatpush.msra.mxu3 %v62_v15  ;;  %764 = vmatpush.msra.mxu2 %v62_v15 }
  0x2e   :  { %130 = vmatmul.f32.vlgmr.msra.gmra.mxu3 %v58_v18  ;;  %118 = vmatmul.f32.vlgmr.msra.gmra.mxu2 %v54_v19  ;;  %v171_v18 = vadd.s32 80, %v950_v33  ;;  %vm455_vm13 = vcmp.eq.s32.totalorder %v198_v16, 4294967294 }
  0x34   :  { %109 = vmatmul.f32.gmra.mxu1 %v51_v20  ;;  %97 = vmatmul.f32.gmra.mxu0 %v47_v21  ;;  %v1797_v21 = vmov 0 }
  0x36   :  { %133 = vmatmul.f32.gmra.mxu3 %v59_v22  ;;  %121 = vmatmul.f32.gmra.mxu2 %v55_v23  ;;  %v164_v22 = vadd.s32 24, %v950_v33 }
  0x38   :  { %v1194_v38 = vsub.s32 %v952_v34, %v164_v22 }
  0x3c   :  { %100 = vmatmul.f32.gmra.mxu0 %v48_v24  ;;  %112 = vmatmul.f32.gmra.mxu1 %v52_v25 }
  0x3e   :  { %124 = vmatmul.f32.gmra.mxu2 %v56_v26  ;;  %136 = vmatmul.f32.gmra.mxu3 %v60_v27  ;;  %v1799_v27 = vmov 0 }
  0x44   :  { %103 = vmatmul.f32.gmra.mxu0 %v49_v28  ;;  %115 = vmatmul.f32.gmra.mxu1 %v53_v29 }
  0x46   :  { %127 = vmatmul.f32.gmra.mxu2 %v57_v30  ;;  %139 = vmatmul.f32.gmra.mxu3 %v61_v31  ;;  %v206_v31 = vsub.s32 %v952_v34, %v171_v18  ;;  %v1843_v30 = vmov 0 }
  0xa9   :  { %v95_v47 = vpop.f32.mrf.mxu0  ;;  %v107_v48 = vpop.f32.mrf.mxu1 }
  0xaa   :  { %143 = vst [vmem:[#allocation7] sm:$0xff] %v95_v47  ;;  %v245_v51 = vmul.f32 5.0, %v95_v47  ;;  %v249_v52 = vmul.f32 5.0, %v107_v48 }
  0xab   :  { %147 = vst [vmem:[#allocation7 + $0x20] sm:$0xff] %v107_v48 }
  0xac   :  { %v1009_v56 = vsel %vm971_vm11, %v249_v52, -1e+30  ;;  %v1013_v57 = vsel %vm984_vm1, %v245_v51, -1e+30  ;;  %vm1028_vm11 = vmand %vm533_vm9, %vm1760_vm4  ;;  %vm221_vm1 = vcmp.ne.s32.totalorder %v1018_v58, 0  ;;  %vm459_vm9 = vcmp.eq.s32.totalorder %v1033_v61, 4294967294 }
  0xad   :  { %285 = vmax.xlane.f32.xlu2 %v1009_v56  ;;  %277 = vmax.xlane.f32.xlu0 %v1013_v57  ;;  %v569_v7 = vsel %vm1046_vm0, %v249_v52, 0.0  ;;  %vm1076_vm8 = vmand %vm1760_vm4, %vm221_vm1  ;;  %v565_v11 = vsel %vm1028_vm11, %v245_v51, 0.0  ;;  %vm491_vm0 = vcmp.eq.s32.totalorder %v1033_v61, 4  ;;  %v1256_v52 = vsub.s32 %v952_v34, %v170_v43 }
  0xae   :  { %vm1102_vm11 = vmor %vm1053_vm5, %vm497_vm10  ;;  %vm518_vm5 = vcmp.eq.s32.totalorder %v1024_v59, 4294967292 }
  0xaf   :  { %vm1112_vm1 = vmand %vm1760_vm4, %vm225_vm12  ;;  %vm439_vm12 = vcmp.eq.s32.totalorder %v198_v16, 2 }
  0xb0   :  { %vm1133_vm10 = vmand %vm1760_vm4, %vm218_vm2  ;;  %vm487_vm2 = vcmp.eq.s32.totalorder %v198_v16, 4 }
  0xb1   :  { %v110_v0 = vpop.f32.mrf.mxu1  ;;  %v131_v1 = vpop.f32.mrf.mxu3  ;;  %v1798_v21 = vsel %vm1133_vm10, 4294967295, %v1797_v21 }
  0xb2   :  { %148 = vst [vmem:[#allocation7 + $0x28] sm:$0xff] %v110_v0  ;;  %v1057_v3 = vmul.f32 5.0, %v110_v0  ;;  %v1059_v4 = vpop.f32.mrf.mxu0  ;;  %v119_v5 = vpop.f32.mrf.mxu2  ;;  %v1117_v15 = vmul.f32 5.0, %v131_v1 }
  0xb3   :  { %155 = vst [vmem:[#allocation7 + $0x60] sm:$0xff] %v131_v1  ;;  %v1106_v13 = vmul.f32 5.0, %v119_v5  ;;  %v1208_v41 = vmul.f32 5.0, %v1059_v4 }
  0xb4   :  { %v570_v10 = vsel %vm1039_vm14, %v1057_v3, 0.0  ;;  %144 = vst [vmem:[#allocation7 + $0x8] sm:$0xff] %v1059_v4  ;;  %vm475_vm14 = vmor %vm443_vm7, %vm459_vm9  ;;  %vm523_vm9 = vcmp.eq.s32.totalorder %v1033_v61, 4294967292  ;;  %v1159_v28 = vsel %vm1112_vm1, %v1117_v15, -1e+30 }
  0xb5   :  { %591 = vadd.xlane.f32.xlu1 %v570_v10  ;;  %581 = vadd.xlane.f32.xlu2 %v565_v11  ;;  %151 = vst [vmem:[#allocation7 + $0x40] sm:$0xff] %v119_v5  ;;  %vm1126_vm7 = vmor %vm475_vm14, %vm491_vm0  ;;  %v1143_v24 = vsel %vm1076_vm8, %v1106_v13, -1e+30  ;;  %vm215_vm8 = vcmp.ne.s32.totalorder %v198_v16, 0  ;;  %v172_v11 = vadd.s32 88, %v950_v33 }
  0xb6   :  { %589 = vadd.xlane.f32.xlu0 %v569_v7  ;;  %vm1152_vm14 = vmor %vm1120_vm3, %vm518_vm5  ;;  %vm447_vm3 = vcmp.eq.s32.totalorder %v206_v31, 2  ;;  %vm463_vm5 = vcmp.eq.s32.totalorder %v206_v31, 4294967294 }
  0xb7   :  { %v1800_v27 = vsel %vm1152_vm14, 4294967295, %v1799_v27  ;;  %vm1165_vm0 = vmor %vm1126_vm7, %vm523_vm9  ;;  %vm529_vm7 = vcmp.eq.s32.totalorder %v998_v53, 4294967292  ;;  %v207_v19 = vsub.s32 %v952_v34, %v172_v11 }
  0xb8   :  { %vm1177_vm1 = vmor %vm439_vm12, %vm455_vm13 }
  0xb9   :  { %v134_v20 = vpop.f32.mrf.mxu3  ;;  %v113_v29 = vpop.f32.mrf.mxu1  ;;  %vm1203_vm9 = vmand %vm1760_vm4, %vm215_vm8  ;;  %vm495_vm8 = vcmp.eq.s32.totalorder %v206_v31, 4 }
  0xba   :  { %156 = vst [vmem:[#allocation7 + $0x68] sm:$0xff] %v134_v20  ;;  %v1138_v23 = vmul.f32 5.0, %v134_v20  ;;  %v101_v25 = vpop.f32.mrf.mxu0  ;;  %v1146_v26 = vpop.f32.mrf.mxu2  ;;  %vm1214_vm12 = vmand %vm1165_vm0, %vm1760_vm4  ;;  %vm440_vm0 = vcmp.eq.s32.totalorder %v1194_v38, 2  ;;  %v1294_v0 = vmul.f32 5.0, %v113_v29 }
  0xbb   :  { %145 = vst [vmem:[#allocation7 + $0x10] sm:$0xff] %v101_v25  ;;  %v1198_v39 = vmul.f32 5.0, %v101_v25  ;;  %vm503_vm13 = vmor %vm1177_vm1, %vm487_vm2  ;;  %vm456_vm1 = vcmp.eq.s32.totalorder %v1194_v38, 4294967294  ;;  %v1370_v18 = vmul.f32 5.0, %v1146_v26 }
  0xbc   :  { %v1173_v32 = vsel %vm1063_vm6, %v1138_v23, -1e+30  ;;  %149 = vst [vmem:[#allocation7 + $0x30] sm:$0xff] %v113_v29  ;;  %vm1188_vm6 = vmand %vm1760_vm4, %vm214_vm15  ;;  %vm519_vm15 = vcmp.eq.s32.totalorder %v198_v16, 4294967292  ;;  %v571_v7 = vsel %vm1214_vm12, %v1294_v0, 0.0 }
  0xbd   :  { %303 = vmax.xlane.f32.xlu1 %v1173_v32  ;;  %293 = vmax.xlane.f32.xlu2 %v1143_v24  ;;  %v1806_v37 = vsel %vm1188_vm6, 4294967295, %v1805_v37  ;;  %152 = vst [vmem:[#allocation7 + $0x48] sm:$0xff] %v1146_v26  ;;  %vm479_vm10 = vmor %vm447_vm3, %vm463_vm5  ;;  %vm527_vm6 = vcmp.eq.s32.totalorder %v206_v31, 4294967292  ;;  %v1236_v47 = vsel %vm1203_vm9, %v1198_v39, -1e+30  ;;  %vm1813_vm3 = vnez %v1800_v27 }
  0xbe   :  { %301 = vmax.xlane.f32.xlu0 %v1159_v28  ;;  %vm1227_vm14 = vmor %vm1102_vm11, %vm529_vm7  ;;  %vm1821_vm9 = vnez %v1798_v21  ;;  %v1381_v21 = vsub.s32 %v952_v34, %v168_v14  ;;  %v176_v27 = vadd.s32 120, %v950_v33 }
  0xbf   :  { %vm511_vm2 = vmor %vm479_vm10, %vm495_vm8  ;;  %vm1818_vm10 = vnez %v1806_v37  ;;  %v1268_v59 = vsel %vm1821_vm9, %v1057_v3, -1e+30  ;;  %vm488_vm8 = vcmp.eq.s32.totalorder %v1194_v38, 4  ;;  %v1851_v37 = vmov 0 }
  0xc0   :  { %vm1242_vm5 = vmand %vm1813_vm3, %vm1760_vm4  ;;  %v1253_v51 = vsel %vm1818_vm10, %v1208_v41, -1e+30  ;;  %vm520_vm10 = vcmp.eq.s32.totalorder %v1194_v38, 4294967292 }
  0xc1   :  { %v137_v46 = vpop.f32.mrf.mxu3  ;;  %vm1246_vm11 = vmor %vm503_vm13, %vm519_vm15  ;;  %vm227_vm13 = vcmp.ne.s32.totalorder %v1223_v44, 0  ;;  %v1277_v60 = vpop.f32.mrf.mxu1  ;;  %v566_v17 = vsel %vm1242_vm5, %v1208_v41, 0.0 }
  0xc2   :  { %v125_v50 = vpop.f32.mrf.mxu2  ;;  %157 = vst [vmem:[#allocation7 + $0x70] sm:$0xff] %v137_v46  ;;  %v1258_v53 = vpop.f32.mrf.mxu0  ;;  %vm1261_vm7 = vmor %vm511_vm2, %vm527_vm6 }
  0xc3   :  { %153 = vst [vmem:[#allocation7 + $0x50] sm:$0xff] %v125_v50  ;;  %vm472_vm15 = vmor %vm440_vm0, %vm456_vm1  ;;  %v1289_v63 = vmul.f32 5.0, %v125_v50  ;;  %vm222_vm0 = vcmp.ne.s32.totalorder %v1256_v52, 0  ;;  %vm223_vm1 = vcmp.ne.s32.totalorder %v206_v31, 0  ;;  %v248_v35 = vmul.f32 5.0, %v1258_v53 }
  0xc4   :  { %146 = vst [vmem:[#allocation7 + $0x18] sm:$0xff] %v1258_v53  ;;  %vm1285_vm6 = vmand %vm1246_vm11, %vm1760_vm4  ;;  %v252_v50 = vmul.f32 5.0, %v1277_v60 }
  0xc5   :  { %287 = vmax.xlane.f32.xlu2 %v1268_v59  ;;  %281 = vmax.xlane.f32.xlu1 %v1236_v47  ;;  %150 = vst [vmem:[#allocation7 + $0x38] sm:$0xff] %v1277_v60  ;;  %vm1300_vm2 = vmand %vm1261_vm7, %vm1760_vm4  ;;  %v567_v8 = vsel %vm1285_vm6, %v1198_v39, 0.0  ;;  %vm530_vm6 = vcmp.eq.s32.totalorder %v1005_v55, 4294967292  ;;  %v211_v39 = vsub.s32 %v952_v34, %v176_v27 }
  0xc6   :  { %279 = vmax.xlane.f32.xlu0 %v1253_v51  ;;  %vm1308_vm3 = vmand %vm1760_vm4, %vm227_vm13  ;;  %v575_v3 = vsel %vm1300_vm2, %v1289_v63, 0.0  ;;  %vm450_vm13 = vcmp.eq.s32.totalorder %v1005_v55, 2  ;;  %vm499_vm2 = vcmp.eq.s32.totalorder %v1223_v44, 4 }
  0xc7   :  { %vm504_vm11 = vmor %vm472_vm15, %vm488_vm8  ;;  %vm466_vm15 = vcmp.eq.s32.totalorder %v1005_v55, 4294967294 }
  0xc8   :  { %vm1318_vm7 = vmand %vm1760_vm4, %vm222_vm0  ;;  %vm498_vm0 = vcmp.eq.s32.totalorder %v1005_v55, 4  ;;  %v1366_v55 = vmul.f32 5.0, %v137_v46 }
  0xc9   :  { %vm1324_vm9 = vmand %vm1760_vm4, %vm223_vm1  ;;  %v1328_v6 = vpop.f32.mrf.mxu3 }
  0xca   :  { %vm1338_vm8 = vmor %vm504_vm11, %vm520_vm10  ;;  %v1342_v10 = vpop.f32.mrf.mxu2  ;;  %158 = vst [vmem:[#allocation7 + $0x78] sm:$0xff] %v1328_v6  ;;  %vm467_vm10 = vcmp.eq.s32.totalorder %v1223_v44, 4294967294  ;;  %v1390_v25 = vsel %vm1308_vm3, %v1366_v55, -1e+30  ;;  %v1395_v26 = vsel %vm1324_vm9, %v1289_v63, -1e+30 }
  0xcb   :  { %154 = vst [vmem:[#allocation7 + $0x58] sm:$0xff] %v1342_v10  ;;  %vm1352_vm12 = vmand %vm1227_vm14, %vm1760_vm4  ;;  %vm451_vm14 = vcmp.eq.s32.totalorder %v1223_v44, 2  ;;  %vm224_vm3 = vcmp.ne.s32.totalorder %v207_v19, 0  ;;  %v1487_v45 = vmul.f32 5.0, %v1342_v10  ;;  %v1507_v53 = vmul.f32 5.0, %v1328_v6 }
  0xcc   :  { %v577_v16 = vsel %vm1352_vm12, %v1117_v15, 0.0  ;;  %vm482_vm1 = vmor %vm450_vm13, %vm466_vm15  ;;  %vm1836_vm13 = vcmp.lt.s32.totalorder %v952_v34, 6  ;;  %vm531_vm15 = vcmp.eq.s32.totalorder %v1223_v44, 4294967292  ;;  %vm448_vm12 = vcmp.eq.s32.totalorder %v207_v19, 2  ;;  %690 = dma.vmem_to_hbm [thread:$0]  %s683_s26, 2048, %s685_s24, [#allocation4], %s914_s20, %s914_s20, %s915_s21  }
  0xcd   :  { %593 = vadd.xlane.f32.xlu2 %v571_v7  ;;  %585 = vadd.xlane.f32.xlu1 %v567_v8  ;;  %vm514_vm11 = vmor %vm482_vm1, %vm498_vm0 }
  0xce   :  { %583 = vadd.xlane.f32.xlu0 %v566_v17  ;;  %vm546_vm4 = vmor %vm514_vm11, %vm530_vm6  ;;  %vm219_vm6 = vcmp.ne.s32.totalorder %v1033_v61, 0  ;;  %vm462_vm11 = vcmp.eq.s32.totalorder %v1256_v52, 4294967294  ;;  %v1402_v61 = vsel %vm1318_vm7, %v1370_v18, -1e+30 }
  0xcf   :  { %vm1375_vm5 = vmand %vm546_vm4, %vm1836_vm13  ;;  %vm446_vm4 = vcmp.eq.s32.totalorder %v1256_v52, 2 }
  0xd0   :  { %v578_v22 = vsel %vm1375_vm5, %v1138_v23, 0.0  ;;  %vm483_vm0 = vmor %vm451_vm14, %vm467_vm10  ;;  %vm1839_vm14 = vcmp.lt.s32.totalorder %v952_v34, 6 }
  0xd1   :  { %vm515_vm1 = vmor %vm483_vm0, %vm499_vm2  ;;  %vm216_vm2 = vcmp.ne.s32.totalorder %v1194_v38, 0  ;;  %v1853_v38 = vmov 0 }
  0xd2   :  { %vm547_vm13 = vmor %vm515_vm1, %vm531_vm15  ;;  %vm460_vm1 = vcmp.eq.s32.totalorder %v1381_v21, 4294967294 }
  0xd3   :  { %vm1408_vm10 = vmand %vm547_vm13, %vm1839_vm14 }
  0xd4   :  { %vm1842_vm9 = vmmov %vm1839_vm14  ;;  %v579_v33 = vsel %vm1408_vm10, %v1366_v55, 0.0  ;;  %vm445_vm14 = vcmp.eq.s32.totalorder %v1018_v58, 2 }
  0xd5   :  { %vm1414_vm0 = vmand %vm1842_vm9, %vm219_vm6  ;;  %305 = vmax.xlane.f32.xlu2 %v1390_v25  ;;  %297 = vmax.xlane.f32.xlu1 %v1395_v26 }
  0xd6   :  { %v1844_v30 = vsel %vm1414_vm0, 4294967295, %v1843_v30  ;;  %vm1845_vm13 = vmmov %vm1842_vm9  ;;  %vm461_vm9 = vcmp.eq.s32.totalorder %v1018_v58, 4294967294  ;;  %295 = vmax.xlane.f32.xlu0 %v1402_v61 }
  0xd7   :  { %vm1430_vm6 = vmand %vm1338_vm8, %vm1845_vm13 }
  0xd8   :  { %vm1848_vm15 = vmmov %vm1845_vm13  ;;  %v568_v43 = vsel %vm1430_vm6, %v248_v35, 0.0 }
  0xd9   :  { %vm1442_vm7 = vmand %vm1848_vm15, %vm216_vm2  ;;  %vm1855_vm2 = vcmp.ne.s32.totalorder %v1381_v21, 0 }
  0xda   :  { %v1850_v36 = vsel %vm1442_vm7, 4294967295, %v1849_v36  ;;  %vm1450_vm8 = vmor %vm446_vm4, %vm462_vm11  ;;  %vm1859_vm4 = vcmp.eq.s32.totalorder %v1381_v21, 2  ;;  %vm528_vm7 = vcmp.eq.s32.totalorder %v207_v19, 4294967292 }
  0xdb   :  { %v1852_v37 = vsel %vm1450_vm8, 4294967295, %v1851_v37  ;;  %vm1458_vm10 = vmand %vm1845_vm13, %vm224_vm3  ;;  %vm464_vm8 = vcmp.eq.s32.totalorder %v207_v19, 4294967294 }
  0xdc   :  { %v1854_v38 = vsel %vm1458_vm10, 4294967295, %v1853_v38  ;;  %vm1856_vm15 = vmmov %vm1845_vm13  ;;  %vm496_vm10 = vcmp.eq.s32.totalorder %v207_v19, 4 }
  0xdd   :  { %vm1466_vm5 = vmand %vm1856_vm15, %vm1855_vm2  ;;  %vm452_vm2 = vcmp.eq.s32.totalorder %v211_v39, 2  ;;  %vm468_vm15 = vcmp.eq.s32.totalorder %v211_v39, 4294967294  ;;  %587 = vadd.xlane.f32.xlu2 %v568_v43 }
  0xde   :  { %vm1472_vm11 = vmor %vm1859_vm4, %vm460_vm1  ;;  %vm1864_vm1 = vnez %v1850_v36  ;;  %vm1865_vm4 = vcmp.lt.s32.totalorder %v952_v34, 6 }
  0xdf   :  { %vm1476_vm3 = vmor %vm445_vm14, %vm461_vm9  ;;  %v1484_v44 = vsel %vm1864_vm1, %v248_v35, -1e+30  ;;  %vm500_vm9 = vcmp.eq.s32.totalorder %v211_v39, 4 }
  0xe0   :  { %vm480_vm13 = vmor %vm448_vm12, %vm464_vm8  ;;  %vm1868_vm8 = vnez %v1844_v30  ;;  %283 = vmax.xlane.f32.xlu1 %v1484_v44 }
  0xe1   :  { %vm512_vm0 = vmor %vm480_vm13, %vm496_vm10  ;;  %vm532_vm10 = vcmp.eq.s32.totalorder %v211_v39, 4294967292  ;;  %v1501_v49 = vsel %vm1868_vm8, %v1294_v0, -1e+30  ;;  %vm494_vm13 = vcmp.eq.s32.totalorder %v1256_v52, 4  ;;  %vm1873_vm8 = vnez %v1852_v37 }
  0xe2   :  { %vm544_vm14 = vmor %vm512_vm0, %vm528_vm7  ;;  %vm228_vm0 = vcmp.ne.s32.totalorder %v211_v39, 0  ;;  %289 = vmax.xlane.f32.xlu0 %v1501_v49  ;;  %v1533_v0 = vsel %vm1466_vm5, %v252_v50, -1e+30 }
  0xe3   :  { %vm1491_vm12 = vmand %vm544_vm14, %vm1865_vm4 }
  0xe4   :  { %v576_v48 = vsel %vm1491_vm12, %v1487_v45, 0.0  ;;  %vm484_vm6 = vmor %vm452_vm2, %vm468_vm15  ;;  %vm492_vm15 = vcmp.eq.s32.totalorder %v1381_v21, 4 }
  0xe5   :  { %vm516_vm7 = vmor %vm484_vm6, %vm500_vm9  ;;  %vm493_vm6 = vcmp.eq.s32.totalorder %v1018_v58, 4 }
  0xe6   :  { %vm548_vm2 = vmor %vm516_vm7, %vm532_vm10  ;;  %vm526_vm7 = vcmp.eq.s32.totalorder %v1256_v52, 4294967292 }
  0xe7   :  { %vm1869_vm1 = vmmov %vm1865_vm4 }
  0xe8   :  { %vm1513_vm14 = vmand %vm548_vm2, %vm1869_vm1  ;;  %vm1874_vm2 = vnez %v1854_v38  ;;  %291 = vmax.xlane.f32.xlu1 %v1533_v0 }
  0xe9   :  { %vm1872_vm9 = vmmov %vm1869_vm1  ;;  %v580_v60 = vsel %vm1513_vm14, %v1507_v53, 0.0  ;;  %v1529_v62 = vsel %vm1874_vm2, %v1487_v45, -1e+30  ;;  %vm524_vm1 = vcmp.eq.s32.totalorder %v1381_v21, 4294967292 }
  0xea   :  { %vm244_vm4 = vmand %vm1872_vm9, %vm228_vm0  ;;  %vm525_vm9 = vcmp.eq.s32.totalorder %v1018_v58, 4294967292  ;;  %299 = vmax.xlane.f32.xlu2 %v1529_v62 }
  0xeb   :  { %vm510_vm10 = vmor %vm1873_vm8, %vm494_vm13  ;;  %v1539_v2 = vsel %vm244_vm4, %v1507_v53, -1e+30 }
  0xec   :  { %vm508_vm0 = vmor %vm1472_vm11, %vm492_vm15  ;;  %307 = vmax.xlane.f32.xlu0 %v1539_v2  ;;  %vm1875_vm11 = vcmp.lt.s32.totalorder %v952_v34, 6 }
  0xed   :  { %vm509_vm13 = vmor %vm1476_vm3, %vm493_vm6 }
  0xee   :  { %vm542_vm8 = vmor %vm510_vm10, %vm526_vm7 }
  0xef   :  { %vm540_vm5 = vmor %vm508_vm0, %vm524_vm1  ;;  %vm661_vm1 = vcmask 7168  }
  0xf0   :  { %vm541_vm2 = vmor %vm509_vm13, %vm525_vm9 }
  0xf1   :  { %vm558_vm15 = vmand %vm542_vm8, %vm1875_vm11 }
  0xf2   :  { %vm1876_vm4 = vmmov %vm1875_vm11  ;;  %v574_v58 = vsel %vm558_vm15, %v1370_v18, 0.0 }
  0xf3   :  { %vm556_vm14 = vmand %vm540_vm5, %vm1876_vm4  ;;  %599 = vadd.xlane.f32.xlu2 %v574_v58 }
  0xf4   :  { %vm1877_vm12 = vmmov %vm1876_vm4  ;;  %v572_v52 = vsel %vm556_vm14, %v252_v50, 0.0 }
  0xf5   :  { %vm557_vm3 = vmand %vm541_vm2, %vm1877_vm12  ;;  %595 = vadd.xlane.f32.xlu0 %v572_v52 }
  0xf6   :  { %v573_v4 = vsel %vm557_vm3, %v1106_v13, 0.0 }
  0xf7   :  { %597 = vadd.xlane.f32.xlu1 %v573_v4 }
 0x120   :  { %v1555_v5 = vpop.xlane.xlu2 %285  ;;  %v1557_v6 = vpop.xlane.xlu0 %277 }
 0x121   :  { %v313_v7 = vsub.f32 %v1009_v56, %v1555_v5  ;;  %v309_v8 = vsub.f32 %v1013_v57, %v1557_v6 }
 0x123   :  { %v333_v34 = vmul.f32 1.442695, %v313_v7  ;;  %v325_v9 = vmul.f32 1.442695, %v309_v8 }
 0x125   :  { %771 = vpow2.f32 %v333_v34 }
 0x126   :  { %773 = vpow2.f32 %v325_v9 }
 0x128   :  { %v1563_v10 = vpop.xlane.xlu1 %591  ;;  %v1565_v13 = vpop.xlane.xlu2 %581 }
 0x129   :  { %v1567_v11 = vpop.xlane.xlu0 %589  ;;  %v613_v55 = vmul.f32 0.5, %v1565_v13 }
 0x12a   :  { %v617_v45 = vmul.f32 0.5, %v1567_v11 }
 0x12b   :  { %v772_v14 = vpop.eup %771 }
 0x12c   :  { %v774_v17 = vpop.eup %773  ;;  %365 = vadd.xlane.f32.xlu2 %v772_v14 }
 0x12d   :  { %357 = vadd.xlane.f32.xlu1 %v774_v17 }
 0x130   :  { %v1569_v18 = vpop.xlane.xlu1 %303  ;;  %v1571_v56 = vpop.xlane.xlu2 %293 }
 0x131   :  { %v317_v57 = vsub.f32 %v1143_v24, %v1571_v56  ;;  %v1575_v19 = vpop.xlane.xlu0 %301  ;;  %v322_v41 = vsub.f32 %v1173_v32, %v1569_v18 }
 0x132   :  { %v321_v21 = vsub.f32 %v1159_v28, %v1575_v19 }
 0x133   :  { %v341_v27 = vmul.f32 1.442695, %v317_v57  ;;  %v351_v50 = vmul.f32 1.442695, %v322_v41 }
 0x134   :  { %v349_v30 = vmul.f32 1.442695, %v321_v21 }
 0x135   :  { %775 = vpow2.f32 %v341_v27 }
 0x136   :  { %777 = vpow2.f32 %v349_v30 }
 0x138   :  { %v1579_v31 = vpop.xlane.xlu2 %287  ;;  %v1581_v35 = vpop.xlane.xlu1 %281 }
 0x139   :  { %v314_v36 = vsub.f32 %v1268_v59, %v1579_v31  ;;  %v1585_v37 = vpop.xlane.xlu0 %279  ;;  %v311_v42 = vsub.f32 %v1236_v47, %v1581_v35 }
 0x13a   :  { %v310_v24 = vsub.f32 %v1253_v51, %v1585_v37 }
 0x13b   :  { %v335_v39 = vmul.f32 1.442695, %v314_v36  ;;  %v776_v38 = vpop.eup %775  ;;  %v329_v52 = vmul.f32 1.442695, %v311_v42 }
 0x13c   :  { %v327_v40 = vmul.f32 1.442695, %v310_v24  ;;  %v778_v28 = vpop.eup %777  ;;  %373 = vadd.xlane.f32.xlu0 %v776_v38 }
 0x13d   :  { %779 = vpow2.f32 %v335_v39  ;;  %381 = vadd.xlane.f32.xlu1 %v778_v28 }
 0x13e   :  { %781 = vpow2.f32 %v327_v40 }
 0x13f   :  { %783 = vpow2.f32 %v351_v50 }
 0x140   :  { %v1593_v59 = vpop.xlane.xlu2 %593  ;;  %v1595_v43 = vpop.xlane.xlu1 %585  ;;  %785 = vpow2.f32 %v329_v52 }
 0x141   :  { %v1597_v51 = vpop.xlane.xlu0 %583 }
 0x143   :  { %v780_v58 = vpop.eup %779 }
 0x144   :  { %v782_v4 = vpop.eup %781  ;;  %367 = vadd.xlane.f32.xlu0 %v780_v58 }
 0x145   :  { %359 = vadd.xlane.f32.xlu2 %v782_v4  ;;  %v784_v14 = vpop.eup %783 }
 0x146   :  { %v786_v21 = vpop.eup %785 }
 0x148   :  { %v1599_v32 = vpop.xlane.xlu2 %305  ;;  %v1601_v7 = vpop.xlane.xlu1 %297 }
 0x149   :  { %v323_v47 = vsub.f32 %v1390_v25, %v1599_v32  ;;  %v1605_v8 = vpop.xlane.xlu0 %295  ;;  %v319_v34 = vsub.f32 %v1395_v26, %v1601_v7 }
 0x14a   :  { %v318_v9 = vsub.f32 %v1402_v61, %v1605_v8 }
 0x14b   :  { %v353_v17 = vmul.f32 1.442695, %v323_v47  ;;  %v345_v57 = vmul.f32 1.442695, %v319_v34 }
 0x14c   :  { %v343_v27 = vmul.f32 1.442695, %v318_v9  ;;  %361 = vadd.xlane.f32.xlu0 %v786_v21 }
 0x14d   :  { %787 = vpow2.f32 %v353_v17  ;;  %383 = vadd.xlane.f32.xlu2 %v784_v14 }
 0x14e   :  { %789 = vpow2.f32 %v343_v27 }
 0x14f   :  { %791 = vpow2.f32 %v345_v57 }
 0x150   :  { %v1611_v30 = vpop.xlane.xlu2 %587 }
 0x153   :  { %v1613_v25 = vpop.xlane.xlu1 %283  ;;  %v788_v61 = vpop.eup %787 }
 0x154   :  { %v790_v24 = vpop.eup %789  ;;  %385 = vadd.xlane.f32.xlu0 %v788_v61  ;;  %v312_v40 = vsub.f32 %v1484_v44, %v1613_v25 }
 0x155   :  { %v1615_v36 = vpop.xlane.xlu0 %289  ;;  %v792_v38 = vpop.eup %791  ;;  %375 = vadd.xlane.f32.xlu1 %v790_v24 }
 0x156   :  { %v315_v26 = vsub.f32 %v1501_v49, %v1615_v36  ;;  %377 = vadd.xlane.f32.xlu2 %v792_v38  ;;  %v331_v50 = vmul.f32 1.442695, %v312_v40  ;;  %v618_v40 = vmul.f32 0.5, %v1563_v10  ;;  %v615_v10 = vmul.f32 0.5, %v1595_v43 }
 0x158   :  { %v337_v39 = vmul.f32 1.442695, %v315_v26 }
 0x15a   :  { %793 = vpow2.f32 %v337_v39 }
 0x15b   :  { %v1623_v41 = vpop.xlane.xlu1 %291 }
 0x15c   :  { %v316_v49 = vsub.f32 %v1533_v0, %v1623_v41 }
 0x15d   :  { %v1621_v28 = vpop.xlane.xlu2 %299 }
 0x15e   :  { %v320_v42 = vsub.f32 %v1529_v62, %v1621_v28  ;;  %v339_v4 = vmul.f32 1.442695, %v316_v49 }
 0x15f   :  { %v1629_v52 = vpop.xlane.xlu0 %307 }
 0x160   :  { %v347_v58 = vmul.f32 1.442695, %v320_v42  ;;  %v794_v47 = vpop.eup %793  ;;  %v324_v44 = vsub.f32 %v1539_v2, %v1629_v52 }
 0x161   :  { %369 = vadd.xlane.f32.xlu1 %v794_v47 }
 0x162   :  { %795 = vpow2.f32 %v347_v58  ;;  %v355_v34 = vmul.f32 1.442695, %v324_v44 }
 0x163   :  { %797 = vpow2.f32 %v331_v50 }
 0x164   :  { %799 = vpow2.f32 %v339_v4 }
 0x165   :  { %801 = vpow2.f32 %v355_v34 }
 0x166   :  { %v1663_v15 = vpop.xlane.xlu2 %599 }
 0x168   :  { %v796_v9 = vpop.eup %795  ;;  %v1665_v20 = vpop.xlane.xlu0 %595 }
 0x169   :  { %v798_v14 = vpop.eup %797  ;;  %379 = vadd.xlane.f32.xlu0 %v796_v9 }
 0x16a   :  { %v800_v62 = vpop.eup %799  ;;  %363 = vadd.xlane.f32.xlu1 %v798_v14  ;;  %v598_v23 = vpop.xlane.xlu1 %597 }
 0x16b   :  { %371 = vadd.xlane.f32.xlu2 %v800_v62  ;;  %v802_v0 = vpop.eup %801  ;;  %v621_v11 = vmul.f32 0.5, %v598_v23 }
 0x171   :  { %601 = vadd.xlane.f32.xlu0 %v575_v3 }
 0x172   :  { %387 = vadd.xlane.f32.xlu1 %v802_v0 }
 0x173   :  { %605 = vadd.xlane.f32.xlu2 %v577_v16 }
 0x179   :  { %607 = vadd.xlane.f32.xlu0 %v578_v22 }
 0x17a   :  { %603 = vadd.xlane.f32.xlu1 %v576_v48 }
 0x17b   :  { %611 = vadd.xlane.f32.xlu2 %v580_v60 }
 0x182   :  { %609 = vadd.xlane.f32.xlu1 %v579_v33 }
 0x19f   :  { %v366_v63 = vpop.xlane.xlu2 %365 }
 0x1a0   :  { %803 = vlog2.f32 %v366_v63  ;;  %v358_v1 = vpop.xlane.xlu1 %357 }
 0x1a1   :  { %805 = vlog2.f32 %v358_v1 }
 0x1a6   :  { %v804_v3 = vpop.eup %803 }
 0x1a7   :  { %v806_v12 = vpop.eup %805  ;;  %v398_v16 = vmul.f32 0.6931472, %v804_v3  ;;  %v622_v3 = vmul.f32 0.5, %v1663_v15 }
 0x1a8   :  { %v390_v22 = vmul.f32 0.6931472, %v806_v12 }
 0x1a9   :  { %v425_v29 = vadd.f32 %v398_v16, %v1555_v5 }
 0x1aa   :  { %v421_v33 = vadd.f32 %v390_v22, %v1557_v6 }
 0x1ab   :  { %v633_v46 = vsub.f32 %v425_v29, %v617_v45 }
 0x1ac   :  { %v629_v48 = vsub.f32 %v421_v33, %v613_v55 }
 0x1ad   :  { %v706_v53 = vadd.f32 -0.6931472, %v633_v46  ;;  %v619_v46 = vmul.f32 0.5, %v1593_v59 }
 0x1ae   :  { %v702_v54 = vadd.f32 -0.6931472, %v629_v48 }
 0x1af   :  { %666 = vst.msk [vmem:[%s1759_s3 + $0x20] sm:$0xff] %vm661_vm1, %v706_v53  ;;  %v374_v60 = vpop.xlane.xlu0 %373 }
 0x1b0   :  { %662 = vst.msk [vmem:[%s1759_s3] sm:$0xff] %vm661_vm1, %v702_v54  ;;  %807 = vlog2.f32 %v374_v60  ;;  %v382_v61 = vpop.xlane.xlu1 %381 }
 0x1b6   :  { %v808_v2 = vpop.eup %807 }
 0x1b7   :  { %v406_v5 = vmul.f32 0.6931472, %v808_v2  ;;  %v368_v6 = vpop.xlane.xlu0 %367 }
 0x1b8   :  { %v360_v13 = vpop.xlane.xlu2 %359  ;;  %809 = vlog2.f32 %v368_v6 }
 0x1b9   :  { %v429_v17 = vadd.f32 %v406_v5, %v1571_v56  ;;  %811 = vlog2.f32 %v360_v13  ;;  %v614_v56 = vmul.f32 0.5, %v1597_v51 }
 0x1bb   :  { %v637_v57 = vsub.f32 %v429_v17, %v621_v11 }
 0x1bd   :  { %v710_v21 = vadd.f32 -0.6931472, %v637_v57  ;;  %v616_v57 = vmul.f32 0.5, %v1611_v30 }
 0x1be   :  { %v810_v27 = vpop.eup %809 }
 0x1bf   :  { %v812_v26 = vpop.eup %811  ;;  %670 = vst.msk [vmem:[%s1759_s3 + $0x40] sm:$0xff] %vm661_vm1, %v710_v21  ;;  %v400_v24 = vmul.f32 0.6931472, %v810_v27  ;;  %v362_v39 = vpop.xlane.xlu0 %361 }
 0x1c0   :  { %v392_v38 = vmul.f32 0.6931472, %v812_v26  ;;  %813 = vlog2.f32 %v362_v39  ;;  %v384_v47 = vpop.xlane.xlu2 %383 }
 0x1c1   :  { %v426_v42 = vadd.f32 %v400_v24, %v1579_v31 }
 0x1c2   :  { %v422_v49 = vadd.f32 %v392_v38, %v1585_v37  ;;  %v620_v38 = vmul.f32 0.5, %v1665_v20 }
 0x1c3   :  { %v634_v50 = vsub.f32 %v426_v42, %v618_v40 }
 0x1c4   :  { %v630_v58 = vsub.f32 %v422_v49, %v614_v56 }
 0x1c5   :  { %v707_v4 = vadd.f32 -0.6931472, %v634_v50 }
 0x1c6   :  { %v814_v44 = vpop.eup %813  ;;  %v703_v34 = vadd.f32 -0.6931472, %v630_v58 }
 0x1c7   :  { %667 = vst.msk [vmem:[%s1759_s3 + $0x28] sm:$0xff] %vm661_vm1, %v707_v4  ;;  %v394_v9 = vmul.f32 0.6931472, %v814_v44  ;;  %v386_v62 = vpop.xlane.xlu0 %385 }
 0x1c8   :  { %v376_v14 = vpop.xlane.xlu1 %375  ;;  %663 = vst.msk [vmem:[%s1759_s3 + $0x8] sm:$0xff] %vm661_vm1, %v703_v34 }
 0x1c9   :  { %v423_v31 = vadd.f32 %v394_v9, %v1581_v35  ;;  %815 = vlog2.f32 %v376_v14  ;;  %v378_v0 = vpop.xlane.xlu2 %377 }
 0x1cb   :  { %v631_v37 = vsub.f32 %v423_v31, %v615_v10 }
 0x1cd   :  { %v704_v51 = vadd.f32 -0.6931472, %v631_v37 }
 0x1cf   :  { %664 = vst.msk [vmem:[%s1759_s3 + $0x10] sm:$0xff] %vm661_vm1, %v704_v51  ;;  %v816_v63 = vpop.eup %815 }
 0x1d0   :  { %v408_v1 = vmul.f32 0.6931472, %v816_v63 }
 0x1d2   :  { %v430_v43 = vadd.f32 %v408_v1, %v1605_v8 }
 0x1d4   :  { %v370_v23 = vpop.xlane.xlu1 %369  ;;  %v638_v35 = vsub.f32 %v430_v43, %v622_v3 }
 0x1d5   :  { %817 = vlog2.f32 %v370_v23 }
 0x1d6   :  { %819 = vlog2.f32 %v378_v0  ;;  %v711_v22 = vadd.f32 -0.6931472, %v638_v35 }
 0x1d7   :  { %821 = vlog2.f32 %v382_v61 }
 0x1d8   :  { %823 = vlog2.f32 %v384_v47  ;;  %671 = vst.msk [vmem:[%s1759_s3 + $0x48] sm:$0xff] %vm661_vm1, %v711_v22 }
 0x1db   :  { %v818_v12 = vpop.eup %817 }
 0x1dc   :  { %v380_v16 = vpop.xlane.xlu0 %379  ;;  %v402_v45 = vmul.f32 0.6931472, %v818_v12  ;;  %v820_v55 = vpop.eup %819 }
 0x1dd   :  { %v364_v29 = vpop.xlane.xlu1 %363  ;;  %v822_v15 = vpop.eup %821  ;;  %v410_v48 = vmul.f32 0.6931472, %v820_v55 }
 0x1de   :  { %v372_v33 = vpop.xlane.xlu2 %371  ;;  %825 = vlog2.f32 %v364_v29  ;;  %v427_v8 = vadd.f32 %v402_v45, %v1615_v36  ;;  %v824_v54 = vpop.eup %823  ;;  %v414_v60 = vmul.f32 0.6931472, %v822_v15 }
 0x1df   :  { %827 = vlog2.f32 %v372_v33  ;;  %v431_v59 = vadd.f32 %v410_v48, %v1601_v7  ;;  %v416_v40 = vmul.f32 0.6931472, %v824_v54 }
 0x1e0   :  { %v635_v53 = vsub.f32 %v427_v8, %v619_v46  ;;  %829 = vlog2.f32 %v380_v16  ;;  %v433_v61 = vadd.f32 %v414_v60, %v1575_v19 }
 0x1e1   :  { %v434_v20 = vadd.f32 %v416_v40, %v1569_v18 }
 0x1e2   :  { %v708_v2 = vadd.f32 -0.6931472, %v635_v53 }
 0x1e4   :  { %v826_v5 = vpop.eup %825  ;;  %v602_v6 = vpop.xlane.xlu0 %601  ;;  %668 = vst.msk [vmem:[%s1759_s3 + $0x30] sm:$0xff] %vm661_vm1, %v708_v2 }
 0x1e5   :  { %v828_v13 = vpop.eup %827  ;;  %v396_v11 = vmul.f32 0.6931472, %v826_v5  ;;  %v623_v36 = vmul.f32 0.5, %v602_v6  ;;  %v388_v17 = vpop.xlane.xlu1 %387 }
 0x1e6   :  { %v404_v21 = vmul.f32 0.6931472, %v828_v13  ;;  %v606_v27 = vpop.xlane.xlu2 %605  ;;  %831 = vlog2.f32 %v388_v17  ;;  %v830_v26 = vpop.eup %829 }
 0x1e7   :  { %v424_v24 = vadd.f32 %v396_v11, %v1613_v25  ;;  %v639_v39 = vsub.f32 %v431_v59, %v623_v36  ;;  %v625_v7 = vmul.f32 0.5, %v606_v27  ;;  %833 = vlog2.f32 %v386_v62 }
 0x1e8   :  { %v428_v42 = vadd.f32 %v404_v21, %v1623_v41  ;;  %v412_v30 = vmul.f32 0.6931472, %v830_v26 }
 0x1e9   :  { %v632_v56 = vsub.f32 %v424_v24, %v616_v57  ;;  %v712_v49 = vadd.f32 -0.6931472, %v639_v39  ;;  %v641_v50 = vsub.f32 %v433_v61, %v625_v7 }
 0x1ea   :  { %v636_v58 = vsub.f32 %v428_v42, %v620_v38  ;;  %v432_v14 = vadd.f32 %v412_v30, %v1621_v28 }
 0x1eb   :  { %v705_v4 = vadd.f32 -0.6931472, %v632_v56  ;;  %672 = vst.msk [vmem:[%s1759_s3 + $0x50] sm:$0xff] %vm661_vm1, %v712_v49  ;;  %v714_v19 = vadd.f32 -0.6931472, %v641_v50 }
 0x1ec   :  { %v832_v25 = vpop.eup %831  ;;  %v709_v47 = vadd.f32 -0.6931472, %v636_v58  ;;  %v608_v44 = vpop.xlane.xlu0 %607 }
 0x1ed   :  { %665 = vst.msk [vmem:[%s1759_s3 + $0x18] sm:$0xff] %vm661_vm1, %v705_v4  ;;  %v420_v41 = vmul.f32 0.6931472, %v832_v25  ;;  %v626_v34 = vmul.f32 0.5, %v608_v44  ;;  %v604_v9 = vpop.xlane.xlu1 %603  ;;  %v834_v37 = vpop.eup %833 }
 0x1ee   :  { %669 = vst.msk [vmem:[%s1759_s3 + $0x38] sm:$0xff] %vm661_vm1, %v709_v47  ;;  %v612_v10 = vpop.xlane.xlu2 %611  ;;  %v624_v31 = vmul.f32 0.5, %v604_v9  ;;  %v418_v63 = vmul.f32 0.6931472, %v834_v37 }
 0x1ef   :  { %674 = vst.msk [vmem:[%s1759_s3 + $0x60] sm:$0xff] %vm661_vm1, %v714_v19  ;;  %v642_v51 = vsub.f32 %v434_v20, %v626_v34  ;;  %v436_v18 = vadd.f32 %v420_v41, %v1629_v52  ;;  %v628_v62 = vmul.f32 0.5, %v612_v10 }
 0x1f0   :  { %v640_v0 = vsub.f32 %v432_v14, %v624_v31  ;;  %v435_v43 = vadd.f32 %v418_v63, %v1599_v32 }
 0x1f1   :  { %v715_v23 = vadd.f32 -0.6931472, %v642_v51  ;;  %v644_v28 = vsub.f32 %v436_v18, %v628_v62 }
 0x1f2   :  { %v713_v1 = vadd.f32 -0.6931472, %v640_v0 }
 0x1f3   :  { %675 = vst.msk [vmem:[%s1759_s3 + $0x68] sm:$0xff] %vm661_vm1, %v715_v23  ;;  %v717_v3 = vadd.f32 -0.6931472, %v644_v28 }
 0x1f4   :  { %673 = vst.msk [vmem:[%s1759_s3 + $0x58] sm:$0xff] %vm661_vm1, %v713_v1 }
 0x1f5   :  { %677 = vst.msk [vmem:[%s1759_s3 + $0x78] sm:$0xff] %vm661_vm1, %v717_v3  ;;  %v610_v52 = vpop.xlane.xlu1 %609 }
 0x1f6   :  { %v627_v35 = vmul.f32 0.5, %v610_v52 }
 0x1f8   :  { %v643_v12 = vsub.f32 %v435_v43, %v627_v35 }
 0x1fa   :  { %v716_v16 = vadd.f32 -0.6931472, %v643_v12 }
 0x1fc   :  { %676 = vst.msk [vmem:[%s1759_s3 + $0x70] sm:$0xff] %vm661_vm1, %v716_v16 }
 0x1fd   :  { %911 = dma.done.wait [#allocation4], 2048  }
 0x1fe   :  { %912 = vsyncadd [#allocation4], 4294965248 }
 0x1ff   :  { %699 = vsyncpa [#allocation3], 1 }
 0x200   :  { %700 = vsyncpa [#allocation6], 1 }
 0x201   :  { %701 = vsyncpa [#allocation4], 1 }

</bundles_post_ra>
